<compile_context>
chip_gen: v7x
topology: tpu7x:2x2x1
jax: 0.10.0
libtpu: 0.0.40
codegen_flags: <defaults>
</compile_context>

<pallas_src>
import functools

import jax
import jax.numpy as jnp
from jax import lax
from jax.experimental import pallas as pl
from jax.experimental.pallas import tpu as pltpu


def _round_up(x, m):
    return ((x + m - 1) // m) * m


def _mahn_kernel(s_ref, x_ref, out_ref, *, sep, beta, n_keys, n_keys_pad):
    """Fused MAHN step for one query tile.

    s_ref  : (TQ, Np)  query tile
    x_ref  : (Pp, Np)  full (zero-padded) stored-memory matrix, VMEM resident
    out_ref: (TQ, Np)  output tile
    """
    s = s_ref[...]
    # K / V derived in-VMEM from the single X block (single HBM copy of X).
    k = x_ref[pl.ds(0, n_keys_pad), :]   # rows 0 .. n_keys_pad-1
    v = x_ref[pl.ds(1, n_keys_pad), :]   # rows 1 .. n_keys_pad

    # raw = s @ K^T : contract the lane (N) dim of both operands directly
    # (no explicit transpose), accumulate in f32 on the MXU.
    raw = lax.dot_general(
        s, k,
        dimension_numbers=(((1,), (1,)), ((), ())),
        preferred_element_type=jnp.float32,
    )  # (TQ, n_keys_pad), f32

    # Key-validity mask: only the first n_keys rows of X are keys
    # (row P-1 is a value only; rows >= P are zero padding).
    valid = lax.broadcasted_iota(jnp.int32, raw.shape, 1) < n_keys

    if sep == "exp":
        score = jnp.exp(jnp.where(valid, raw, 0.0))
    elif sep == "softmax":
        z = jnp.where(valid, beta * raw, jnp.float32(-1e30))
        m = jnp.max(z, axis=-1, keepdims=True)
        p = jnp.exp(z - m)
        denom = jnp.sum(p, axis=-1, keepdims=True)
        score = p * pl.reciprocal(denom, approx=True)   # EUP slot
    else:
        # polynomial separation: score = raw ** int(sep)
        score = jnp.where(valid, raw, 0.0) ** int(sep)

    # Invalid/padded key columns multiply all-zero V rows -> contribute nothing.
    out = lax.dot_general(
        score.astype(v.dtype), v,
        dimension_numbers=(((1,), (0,)), ((), ())),
        preferred_element_type=jnp.float32,
    )
    out_ref[...] = out.astype(out_ref.dtype)


def mahn_forward(X, s, *, sep="softmax", beta=1.0, query_tile=512):
    """JAX wrapper reproducing ModernAsymmetricHopfieldNetwork.forward.

    X: (P, N) stored memories
    s: (P-1, N) queries
    returns: (P-1, N)
    """
    P, N = X.shape
    M, N2 = s.shape
    assert N == N2 and M == P - 1 and P >= 2

    out_dtype = jnp.result_type(X.dtype, s.dtype)

    n_keys = P - 1
    n_keys_pad = _round_up(n_keys, 8)
    p_pad = n_keys_pad + 8               # room for the V slice X[1 : n_keys_pad+1]
    n_pad = _round_up(N, 128)            # lane-dense tiles -> unmasked stores

    tq = min(_round_up(M, 8), _round_up(query_tile, 8))
    m_pad = _round_up(M, tq)

    x_p = jnp.zeros((p_pad, n_pad), X.dtype).at[:P, :N].set(X)
    s_p = jnp.zeros((m_pad, n_pad), s.dtype).at[:M, :N].set(s)

    kernel = functools.partial(
        _mahn_kernel, sep=sep, beta=float(beta),
        n_keys=n_keys, n_keys_pad=n_keys_pad)

    flops = 4 * M * n_keys * N                       # two matmuls
    transcendentals = M * n_keys if sep in ("exp", "softmax") else 0
    bytes_accessed = int(x_p.size * x_p.dtype.itemsize
                         + s_p.size * s_p.dtype.itemsize
                         + m_pad * n_pad * jnp.dtype(out_dtype).itemsize)

    out_p = pl.pallas_call(
        kernel,
        out_shape=jax.ShapeDtypeStruct((m_pad, n_pad), out_dtype),
        grid_spec=pl.GridSpec(
            grid=(m_pad // tq,),
            in_specs=[
                pl.BlockSpec((tq, n_pad), lambda i: (i, 0)),      # query tile
                pl.BlockSpec((p_pad, n_pad), lambda i: (0, 0)),   # X, VMEM resident
            ],
            out_specs=pl.BlockSpec((tq, n_pad), lambda i: (i, 0)),
        ),
        compiler_params=pltpu.CompilerParams(
            dimension_semantics=("parallel",),
        ),
        cost_estimate=pl.CostEstimate(
            flops=flops,
            transcendentals=transcendentals,
            bytes_accessed=bytes_accessed,
        ),
    )(s_p, x_p)

    return out_p[:M, :N]


def _reference(X, s, sep="softmax", beta=1.0):
    K = X[:-1]
    V = X[1:]
    raw = s @ K.T
    if sep == "exp":
        score = jnp.exp(raw)
    elif sep == "softmax":
        score = jax.nn.softmax(beta * raw, axis=1)
    else:
        score = raw ** int(sep)
    return score @ V


if __name__ == "__main__":
    key = jax.random.PRNGKey(0)
    ok = True

    # Case 1: aligned-ish small shapes (P=9, N=32), all separation modes.
    kx, ks = jax.random.split(key)
    P, N = 9, 32
    X = jax.random.normal(kx, (P, N), dtype=jnp.float32)
    s = jax.random.normal(ks, (P - 1, N), dtype=jnp.float32)
    for sep in ("softmax", "exp", "2"):
        out = jax.block_until_ready(mahn_forward(X, s, sep=sep, beta=1.0))
        ref = _reference(X, s, sep=sep, beta=1.0)
        if not jnp.allclose(out, ref, rtol=2e-3, atol=1e-2):
            ok = False
            print(f"MISMATCH case1 sep={sep}: max abs err "
                  f"{float(jnp.max(jnp.abs(out - ref)))}")

    # Case 2: non-multiple shapes (P=13, N=48) to exercise padding/masking.
    kx2, ks2 = jax.random.split(ks)
    P2, N2 = 13, 48
    X2 = jax.random.normal(kx2, (P2, N2), dtype=jnp.float32)
    s2 = jax.random.normal(ks2, (P2 - 1, N2), dtype=jnp.float32)
    for sep in ("softmax", "2"):
        out = jax.block_until_ready(mahn_forward(X2, s2, sep=sep, beta=0.5))
        ref = _reference(X2, s2, sep=sep, beta=0.5)
        if not jnp.allclose(out, ref, rtol=2e-3, atol=1e-2):
            ok = False
            print(f"MISMATCH case2 sep={sep}: max abs err "
                  f"{float(jnp.max(jnp.abs(out - ref)))}")

    if ok:
        print("KERNEL_OK")
</pallas_src>

<mosaic_0001>
module attributes {stable_mosaic.version = 11 : i64} {
  func.func @_mahn_kernel(%arg0: i32, %arg1: memref<8x128xf32, #tpu.memory_space<vmem>>, %arg2: memref<16x128xf32, #tpu.memory_space<vmem>>, %arg3: memref<8x128xf32, #tpu.memory_space<vmem>>) attributes {dimension_semantics = [#tpu.dimension_semantics<parallel>], iteration_bounds = array<i64: 1>, scalar_prefetch = 0 : i64, scratch_operands = 0 : i64, tpu.core_type = #tpu.core_type<tc>, window_params = [{transform_indices = @transform_0, window_bounds = array<i64: 8, 128>}, {pipeline_mode = #tpu.pipeline_mode<synchronous>, transform_indices = @transform_1, window_bounds = array<i64: 16, 128>}, {transform_indices = @transform_2, window_bounds = array<i64: 8, 128>}]} {
    %c0 = arith.constant 0 : index
    %c0_0 = arith.constant 0 : index
    %0 = vector.load %arg1[%c0, %c0_0] : memref<8x128xf32, #tpu.memory_space<vmem>>, vector<8x128xf32>
    %c0_1 = arith.constant 0 : index
    %c0_2 = arith.constant 0 : index
    %1 = vector.load %arg2[%c0_1, %c0_2] : memref<16x128xf32, #tpu.memory_space<vmem>>, vector<8x128xf32>
    %c1 = arith.constant 1 : index
    %c0_3 = arith.constant 0 : index
    %2 = vector.load %arg2[%c1, %c0_3] : memref<16x128xf32, #tpu.memory_space<vmem>>, vector<8x128xf32>
    %cst = arith.constant dense<0.000000e+00> : vector<8x8xf32>
    %3 = tpu.matmul %0, %1, %cst {dimension_numbers = #tpu.dot_dimension_numbers<[1], [1], [0], [0], [0, 0, 1, 0], [], []>} : vector<8x128xf32>, vector<8x128xf32>, vector<8x8xf32> -> vector<8x8xf32>
    %4 = tpu.iota {dimensions = array<i32: 1>} : vector<8x8xi32>
    %c8_i32 = arith.constant 8 : i32
    %5 = vector.broadcast %c8_i32 : i32 to vector<8x8xi32>
    %6 = arith.cmpi slt, %4, %5 : vector<8x8xi32>
    %cst_4 = arith.constant 1.000000e+00 : f32
    %7 = vector.broadcast %cst_4 : f32 to vector<8x8xf32>
    %8 = arith.mulf %7, %3 : vector<8x8xf32>
    %cst_5 = arith.constant -1.000000e+30 : f32
    %9 = vector.broadcast %cst_5 : f32 to vector<8x8xf32>
    %10 = arith.select %6, %8, %9 : vector<8x8xi1>, vector<8x8xf32>
    %cst_6 = arith.constant dense<0xFF800000> : vector<8xf32>
    %11 = vector.multi_reduction <maximumf>, %10, %cst_6 [1] : vector<8x8xf32> to vector<8xf32>
    %12 = vector.shape_cast %11 : vector<8xf32> to vector<8x1xf32>
    %13 = vector.broadcast %12 : vector<8x1xf32> to vector<8x8xf32>
    %14 = arith.subf %10, %13 : vector<8x8xf32>
    %15 = math.exp %14 : vector<8x8xf32>
    %cst_7 = arith.constant dense<0.000000e+00> : vector<8xf32>
    %16 = vector.multi_reduction <add>, %15, %cst_7 [1] : vector<8x8xf32> to vector<8xf32>
    %17 = vector.shape_cast %16 : vector<8xf32> to vector<8x1xf32>
    %18 = tpu.reciprocal %17 {approx = true} : vector<8x1xf32> -> vector<8x1xf32>
    %19 = vector.broadcast %18 : vector<8x1xf32> to vector<8x8xf32>
    %20 = arith.mulf %15, %19 : vector<8x8xf32>
    %cst_8 = arith.constant dense<0.000000e+00> : vector<8x128xf32>
    %21 = tpu.matmul %20, %2, %cst_8 {dimension_numbers = #tpu.dot_dimension_numbers<[1], [0], [0], [1], [0, 0, 1, 1], [], []>} : vector<8x8xf32>, vector<8x128xf32>, vector<8x128xf32> -> vector<8x128xf32>
    %c0_9 = arith.constant 0 : index
    %c0_10 = arith.constant 0 : index
    %22 = vector.load %arg3[%c0_9, %c0_10] : memref<8x128xf32, #tpu.memory_space<vmem>>, vector<8x128xf32>
    tpu.vector_store %arg3[%c0_9, %c0_10], %21 {strides = array<i32>} : memref<8x128xf32, #tpu.memory_space<vmem>>, vector<8x128xf32>,
    return
  }
  func.func @transform_0(%arg0: i32) -> (i32, i32) {
    %c0_i32 = arith.constant 0 : i32
    %c0_i32_0 = arith.constant 0 : i32
    return %arg0, %c0_i32 : i32, i32
  }
  func.func @transform_1(%arg0: i32) -> (i32, i32) {
    %c0_i32 = arith.constant 0 : i32
    %c0_i32_0 = arith.constant 0 : i32
    %c0_i32_1 = arith.constant 0 : i32
    return %c0_i32, %c0_i32_0 : i32, i32
  }
  func.func @transform_2(%arg0: i32) -> (i32, i32) {
    %c0_i32 = arith.constant 0 : i32
    %c0_i32_0 = arith.constant 0 : i32
    return %arg0, %c0_i32 : i32, i32
  }
}

</mosaic_0001>

<bundles_post_ra>
// kernel: tpu_custom_call.1
= control target key start
LH: loop header
LB: loop body
LE: loop exit
PB: predicated region body
PF: predicated region fallthrough
CT: control target
= control target key end

     0   :  { %7 = vsyncpa [#allocation3], 0  ;;  %s383_s0 = inlined_call_operand.hbm [shape: f32[8,128], index: 0, kind: input, shape index: {}]   ;;  %s384_s1 = inlined_call_operand.hbm [shape: f32[16,128], index: 1, kind: input, shape index: {}]   ;;  %s385_s2 = inlined_call_operand.hbm [shape: f32[8,128], index: 2, kind: output, shape index: {}]  }
   0x1   :  { %8 = vsyncpa [#allocation6], 0 }
   0x2   :  { %9 = vsyncpa [#allocation4], 0  ;;  %s315_s9 = smov [#allocation2]   ;;  %s316_s11 = smov [#allocation5]  }
   0x3   :  { %s16_s10 = sshll.u32 %s315_s9, 4  ;;  %s25_s12 = sshll.u32 %s316_s11, 4  ;;  %s17_s10 = int_to_ptr.vmem [resolvable:$true] %s16_s10  ;;  %s337_s12 = int_to_ptr.vmem [resolvable:$true] %s25_s12 }
   0x4   :  { %s243_s15 = scalar_lea.hbm %s383_s0, 128 }
   0x5   :  { %p244_p0 = scmp.ne.s32.totalorder %s383_s0, %s243_s15  ;;  %p247_p1 = scmp.lt.u32.totalorder %s243_s15, %s383_s0 }
   0x7   :  { %p249_p2 = pnand %p247_p1, %p244_p0 }
   0x9   :  { %252 = shalt.err (!%p249_p2)
}
   0xa   :  { %s253_s20 = scalar_lea.vmem %s17_s10, 128  ;;  %p258_p4 = scmp.lt.s32.totalorder %s17_s10, %s17_s10 }
   0xb   :  { %p254_p3 = scmp.ne.s32.totalorder %s17_s10, %s253_s20  ;;  %p259_p5 = scmp.lt.s32.totalorder %s253_s20, %s253_s20 }
   0xd   :  { %p260_p6 = por %p259_p5, %p258_p4 }
   0xf   :  { %p261_p7 = pnand %p260_p6, %p254_p3 }
  0x11   :  { %264 = shalt.err (!%p261_p7)
}
  0x12   :  { %19 = dma.hbm_to_vmem [thread:$0]  %s383_s0, 128, %s17_s10, [#allocation3]  }
  0x13   :  { %s265_s25 = scalar_lea.hbm %s384_s1, 256 }
  0x14   :  { %p266_p8 = scmp.ne.s32.totalorder %s384_s1, %s265_s25  ;;  %p269_p9 = scmp.lt.u32.totalorder %s265_s25, %s384_s1 }
  0x16   :  { %p271_p10 = pnand %p269_p9, %p266_p8 }
  0x18   :  { %274 = shalt.err (!%p271_p10)
}
  0x19   :  { %s275_s30 = scalar_lea.vmem %s337_s12, 256  ;;  %p280_p12 = scmp.lt.s32.totalorder %s337_s12, %s337_s12 }
  0x1a   :  { %p276_p11 = scmp.ne.s32.totalorder %s337_s12, %s275_s30  ;;  %p281_p13 = scmp.lt.s32.totalorder %s275_s30, %s275_s30 }
  0x1c   :  { %p282_p0 = por %p281_p13, %p280_p12 }
  0x1e   :  { %p283_p1 = pnand %p282_p0, %p276_p11 }
  0x20   :  { %286 = shalt.err (!%p283_p1)
}
  0x21   :  { %s317_s0 = smov 128   ;;  %s318_s3 = smov 8  }
  0x22   :  { %31 = dma.hbm_to_vmem [thread:$0]  %s384_s1, 256, %s337_s12, [#allocation6], %s317_s0, %s317_s0, %s318_s3  }
  0x23   :  { %309 = dma.done.wait [#allocation3], 128  }
  0x24   :  { %310 = vsyncadd [#allocation3], 4294967168 }
  0x25   :  { %311 = dma.done.wait [#allocation6], 256  }
  0x26   :  { %312 = vsyncadd [#allocation6], 4294967040  ;;  %v319_v0 = vmov 0.0   ;;  %vm320_vm0 = vmmov 0   ;;  %v39_v1 = vld [vmem:[#allocation5] sm:$0xff]  ;;  %v38_v2 = vld [vmem:[#allocation2] sm:$0xff]  ;;  %v111_v3 = vlaneseq }
  0x27   :  { %222 = vmatprep.subr.mxu0 %v319_v0  ;;  %224 = vmatprep.mubr.msk.f32.mxu0 %vm320_vm0, %v319_v0  ;;  %vm115_vm2 = vcmask 64512   ;;  %v40_v14 = vld [vmem:[#allocation5 + $0x1] sm:$0xff]  ;;  %s321_s1 = smov [#allocation7]  }
  0x28   :  { %227 = vmatprep.subr.mxu1 %v319_v0  ;;  %229 = vmatprep.mubr.msk.f32.mxu1 %vm320_vm0, %v319_v0  ;;  %v112_v4 = vand.u32 127, %v111_v3  ;;  %s207_s6 = sshll.u32 %s321_s1, 4  ;;  %s208_s6 = int_to_ptr.vmem [resolvable:$true] %s207_s6 }
  0x29   :  { %223 = vmatpush3.xpose.msra.mxu0 %v39_v1  ;;  %228 = vmatpush3.msra.mxu1 %v40_v14  ;;  %s287_s7 = scalar_lea.vmem %s208_s6, 128  ;;  %p292_p3 = scmp.lt.s32.totalorder %s208_s6, %s208_s6 }
  0x2a   :  { %vm113_vm1 = vcmp.lt.s32.totalorder %v112_v4, 8  ;;  %p288_p2 = scmp.ne.s32.totalorder %s208_s6, %s287_s7  ;;  %p293_p4 = scmp.lt.s32.totalorder %s287_s7, %s287_s7 }
  0x2c   :  { %225 = vmatmul.mubr.f32.vlgmr.msra.gmra.mrb[0].mxu0 %v38_v2  ;;  %p294_p5 = por %p293_p4, %p292_p3 }
  0x2e   :  { %p295_p6 = pnand %p294_p5, %p288_p2 }
  0xff   :  { %v107_v5 = vpop.f32.mrb[0].mxu0 }
 0x100   :  { %v114_v6 = vsel %vm113_vm1, %v107_v5, -1e+30  ;;  %v226_v7 = vpop.f32.mrb[1].mxu0 }
 0x101   :  { %v116_v8 = vsel %vm115_vm2, %v114_v6, -inf }
 0x102   :  { %117 = vmax.xlane.f32.xlu0 %v116_v8 }
 0x18f   :  { %v118_v9 = vpop.xlane.xlu0 %117 }
 0x190   :  { %v119_v10 = vsub.f32 %v114_v6, %v118_v9 }
 0x192   :  { %v120_v11 = vmul.f32 1.442695, %v119_v10 }
 0x194   :  { %239 = vpow2.f32 %v120_v11 }
 0x19e   :  { %v240_v12 = vpop.eup %239 }
 0x19f   :  { %v122_v13 = vsel %vm115_vm2, %v240_v12, 0.0 }
 0x1a0   :  { %123 = vadd.xlane.f32.xlu0 %v122_v13 }
 0x22d   :  { %v124_v15 = vpop.xlane.xlu0 %123 }
 0x22e   :  { %241 = vrcp.f32 %v124_v15 }
 0x238   :  { %v242_v16 = vpop.eup %241 }
 0x239   :  { %v126_v17 = vmul.f32 %v242_v16, %v240_v12 }
 0x23b   :  { %230 = vmatmul.mubr.msk.f32.vlgmr.msra.gmra.mrb[0].mxu1 %vm115_vm2, %v126_v17 }
 0x30e   :  { %v196_v18 = vpop.f32.mrb[0].mxu1 }
 0x30f   :  { %200 = vst [vmem:[#allocation7] sm:$0xff] %v196_v18  ;;  %v231_v19 = vpop.f32.mrb[1].mxu1 }
 0x310   :  { %298 = shalt.err (!%p295_p6)
}
 0x311   :  { %s299_s10 = scalar_lea.hbm %s385_s2, 128 }
 0x312   :  { %p300_p7 = scmp.ne.s32.totalorder %s385_s2, %s299_s10  ;;  %p303_p8 = scmp.lt.u32.totalorder %s299_s10, %s385_s2 }
 0x314   :  { %p305_p9 = pnand %p303_p8, %p300_p7 }
 0x316   :  { %308 = shalt.err (!%p305_p9)
}
 0x317   :  { %210 = dma.vmem_to_hbm [thread:$0]  %s208_s6, 128, %s385_s2, [#allocation4]  }
 0x318   :  { %313 = dma.done.wait [#allocation4], 128  }
 0x319   :  { %314 = vsyncadd [#allocation4], 4294967168 }
 0x31a   :  { %214 = vsyncpa [#allocation3], 1 }
 0x31b   :  { %215 = vsyncpa [#allocation6], 1 }
 0x31c   :  { %216 = vsyncpa [#allocation4], 1 }

</bundles_post_ra>
